<compile_context>
chip_gen: v7x
topology: tpu7x:2x2x1
jax: 0.10.0
libtpu: 0.0.40
codegen_flags: <defaults>
</compile_context>

<pallas_src>
import jax
import jax.numpy as jnp
from jax.experimental import pallas as pl
from jax.experimental.pallas import tpu as pltpu


def _round_up(x: int, m: int) -> int:
    return (x + m - 1) // m * m


def dqn_mlp_kernel(x_ref, w1_ref, b1_ref, w2_ref, b2_ref, w3_ref, b3_ref, q_ref):
    """Fused 3-layer MLP: relu(relu(x@W1+b1)@W2+b2)@W3+b3 on one batch tile.

    Matmuls run in the weights' dtype (bf16 by default) with f32 MXU accumulation;
    bias add + ReLU stay in f32 (v5e's VPU has no bf16). The state is cast in-kernel,
    so the wrapper never makes an extra pass over the activations.
    """
    x = x_ref[...].astype(w1_ref.dtype)

    h1 = jnp.dot(x, w1_ref[...], preferred_element_type=jnp.float32) + b1_ref[...]
    h1 = jnp.maximum(h1, 0.0).astype(w2_ref.dtype)

    h2 = jnp.dot(h1, w2_ref[...], preferred_element_type=jnp.float32) + b2_ref[...]
    h2 = jnp.maximum(h2, 0.0).astype(w3_ref.dtype)

    q = jnp.dot(h2, w3_ref[...], preferred_element_type=jnp.float32) + b3_ref[...]
    q_ref[...] = q.astype(q_ref.dtype)


def prepare_params(params, compute_dtype=jnp.bfloat16):
    """One-time parameter prep (hoisted out of the forward): cast weights to the MXU
    compute dtype, keep biases f32 and shaped (1, fan_out) for lane broadcast."""
    w1, b1, w2, b2, w3, b3 = params
    cd = compute_dtype
    return (
        w1.astype(cd), b1.astype(jnp.float32).reshape(1, -1),
        w2.astype(cd), b2.astype(jnp.float32).reshape(1, -1),
        w3.astype(cd), b3.astype(jnp.float32).reshape(1, -1),
    )


def _pick_batch_tile(B: int, max_tile: int) -> int:
    """Batch tile: multiple of 8 sublanes (or the full batch for tiny B), as large as
    allowed, but aiming for >= 2 grid steps so both v7x TensorCores get work."""
    SUB = 8
    if B <= SUB:
        return B                      # full-dim block is legal even if not 8-aligned
    half = _round_up(pl.cdiv(B, 2), SUB)   # >=2 tiles when the batch allows it (v7x)
    bt = min(max_tile, half)
    bt = max(SUB, (bt // SUB) * SUB)
    return bt


def dqn_forward(state, prepared_params, *, batch_tile=4096):
    """Batched DQN forward: one pallas_call, grid over batch tiles.

    - state [B, S] streams tile-by-tile at its natural width (no padding, ragged last
      tile handled by the grid); weights/biases are pinned in VMEM via constant-index
      full-array BlockSpecs.
    - Returns Q-values [B, num_actions] in float32.
    """
    w1, b1, w2, b2, w3, b3 = prepared_params
    B, S = state.shape
    H1 = w1.shape[1]
    H2 = w2.shape[1]
    A = w3.shape[1]

    bt = _pick_batch_tile(B, batch_tile)
    grid = (pl.cdiv(B, bt),)

    # Full-array block with constant block index -> parameter stays resident in VMEM.
    resident = lambda shape: pl.BlockSpec(shape, lambda i: (0, 0))

    bytes_per = jnp.dtype(state.dtype).itemsize
    wbytes = sum(int(a.size) * jnp.dtype(a.dtype).itemsize for a in prepared_params)
    cost = pl.CostEstimate(
        flops=2 * B * (S * H1 + H1 * H2 + H2 * A),
        transcendentals=0,
        bytes_accessed=B * S * bytes_per + B * A * 4 + wbytes,
    )

    q = pl.pallas_call(
        dqn_mlp_kernel,
        out_shape=jax.ShapeDtypeStruct((B, A), jnp.float32),
        grid=grid,
        in_specs=[
            pl.BlockSpec((bt, S), lambda i: (i, 0)),   # activations stream with the grid
            resident((S, H1)), resident((1, H1)),
            resident((H1, H2)), resident((1, H2)),
            resident((H2, A)), resident((1, A)),
        ],
        out_specs=pl.BlockSpec((bt, A), lambda i: (i, 0)),
        compiler_params=pltpu.CompilerParams(dimension_semantics=("parallel",)),
        cost_estimate=cost,
    )(state, w1, b1, w2, b2, w3, b3)

    return q


def init_params(key, state_dim, hidden, num_actions):
    """Deterministic init mimicking torch.nn.Linear default (U[-1/sqrt(fan_in), +1/sqrt(fan_in)])."""
    def linear(k, fan_in, fan_out):
        kw, kb = jax.random.split(k)
        bound = 1.0 / jnp.sqrt(jnp.asarray(fan_in, jnp.float32))
        w = jax.random.uniform(kw, (fan_in, fan_out), jnp.float32, -bound, bound)
        b = jax.random.uniform(kb, (fan_out,), jnp.float32, -bound, bound)
        return w, b

    k1, k2, k3 = jax.random.split(key, 3)
    w1, b1 = linear(k1, state_dim, hidden)
    w2, b2 = linear(k2, hidden, hidden)
    w3, b3 = linear(k3, hidden, num_actions)
    return (w1, b1, w2, b2, w3, b3)


def dqn_reference(state, params):
    """Pure-JAX f32 reference for correctness check."""
    w1, b1, w2, b2, w3, b3 = params
    h1 = jnp.maximum(state @ w1 + b1, 0.0)
    h2 = jnp.maximum(h1 @ w2 + b2, 0.0)
    return h2 @ w3 + b3


if __name__ == "__main__":
    STATE_DIM, HIDDEN, NUM_ACTIONS = 16, 64, 4

    key = jax.random.PRNGKey(0)
    k_state, k_params, k_batch, k_rag = jax.random.split(key, 4)
    params = init_params(k_params, STATE_DIM, HIDDEN, NUM_ACTIONS)

    # 1) Tiny batch (B=2), f32 weights: tight correctness check (single full-dim tile).
    prepared_f32 = prepare_params(params, compute_dtype=jnp.float32)
    state_small = jax.random.normal(k_state, (2, STATE_DIM), jnp.float32)
    q_small = jax.block_until_ready(dqn_forward(state_small, prepared_f32))
    q_small_ref = dqn_reference(state_small, params)
    assert q_small.shape == (2, NUM_ACTIONS)
    assert jnp.allclose(q_small, q_small_ref, atol=1e-5, rtol=1e-5)

    # 2) Batched path (grid split in 2 -> both v7x TCs) with bf16 MXU inputs + f32 accumulation.
    prepared_bf16 = prepare_params(params, compute_dtype=jnp.bfloat16)
    state_batch = jax.random.normal(k_batch, (48, STATE_DIM), jnp.float32)
    q_batch = jax.block_until_ready(dqn_forward(state_batch, prepared_bf16))
    q_batch_ref = dqn_reference(state_batch, params)
    assert q_batch.shape == (48, NUM_ACTIONS)
    assert jnp.allclose(q_batch, q_batch_ref, atol=5e-2, rtol=5e-2)

    # 3) Ragged batch (B=50, bt=16 -> grid=4 with a partial last tile), no wrapper padding.
    state_rag = jax.random.normal(k_rag, (50, STATE_DIM), jnp.float32)
    q_rag = jax.block_until_ready(dqn_forward(state_rag, prepared_bf16, batch_tile=16))
    q_rag_ref = dqn_reference(state_rag, params)
    assert q_rag.shape == (50, NUM_ACTIONS)
    assert jnp.allclose(q_rag, q_rag_ref, atol=5e-2, rtol=5e-2)

    print("KERNEL_OK")
</pallas_src>

<mosaic_0001>
module attributes {stable_mosaic.version = 11 : i64} {
  func.func @dqn_mlp_kernel(%arg0: i32, %arg1: memref<2x16xf32, #tpu.memory_space<vmem>>, %arg2: memref<16x64xf32, #tpu.memory_space<vmem>>, %arg3: memref<1x64xf32, #tpu.memory_space<vmem>>, %arg4: memref<64x64xf32, #tpu.memory_space<vmem>>, %arg5: memref<1x64xf32, #tpu.memory_space<vmem>>, %arg6: memref<64x4xf32, #tpu.memory_space<vmem>>, %arg7: memref<1x4xf32, #tpu.memory_space<vmem>>, %arg8: memref<2x4xf32, #tpu.memory_space<vmem>>) attributes {dimension_semantics = [#tpu.dimension_semantics<parallel>], iteration_bounds = array<i64: 1>, scalar_prefetch = 0 : i64, scratch_operands = 0 : i64, tpu.core_type = #tpu.core_type<tc>, window_params = [{transform_indices = @transform_0, window_bounds = array<i64: 2, 16>}, {pipeline_mode = #tpu.pipeline_mode<synchronous>, transform_indices = @transform_1, window_bounds = array<i64: 16, 64>}, {pipeline_mode = #tpu.pipeline_mode<synchronous>, transform_indices = @transform_2, window_bounds = array<i64: 1, 64>}, {pipeline_mode = #tpu.pipeline_mode<synchronous>, transform_indices = @transform_3, window_bounds = array<i64: 64, 64>}, {pipeline_mode = #tpu.pipeline_mode<synchronous>, transform_indices = @transform_4, window_bounds = array<i64: 1, 64>}, {pipeline_mode = #tpu.pipeline_mode<synchronous>, transform_indices = @transform_5, window_bounds = array<i64: 64, 4>}, {pipeline_mode = #tpu.pipeline_mode<synchronous>, transform_indices = @transform_6, window_bounds = array<i64: 1, 4>}, {transform_indices = @transform_7, window_bounds = array<i64: 2, 4>}]} {
    %c0 = arith.constant 0 : index
    %c0_0 = arith.constant 0 : index
    %0 = vector.load %arg1[%c0, %c0_0] : memref<2x16xf32, #tpu.memory_space<vmem>>, vector<2x16xf32>
    %c0_1 = arith.constant 0 : index
    %c0_2 = arith.constant 0 : index
    %1 = vector.load %arg2[%c0_1, %c0_2] : memref<16x64xf32, #tpu.memory_space<vmem>>, vector<16x64xf32>
    %cst = arith.constant dense<0.000000e+00> : vector<2x64xf32>
    %2 = tpu.matmul %0, %1, %cst {dimension_numbers = #tpu.dot_dimension_numbers<[1], [0], [0], [1], [0, 0, 1, 1], [], []>} : vector<2x16xf32>, vector<16x64xf32>, vector<2x64xf32> -> vector<2x64xf32>
    %c0_3 = arith.constant 0 : index
    %c0_4 = arith.constant 0 : index
    %3 = vector.load %arg3[%c0_3, %c0_4] : memref<1x64xf32, #tpu.memory_space<vmem>>, vector<1x64xf32>
    %4 = vector.broadcast %3 : vector<1x64xf32> to vector<2x64xf32>
    %5 = arith.addf %2, %4 : vector<2x64xf32>
    %cst_5 = arith.constant 0.000000e+00 : f32
    %6 = vector.broadcast %cst_5 : f32 to vector<2x64xf32>
    %7 = arith.maximumf %5, %6 : vector<2x64xf32>
    %c0_6 = arith.constant 0 : index
    %c0_7 = arith.constant 0 : index
    %8 = vector.load %arg4[%c0_6, %c0_7] : memref<64x64xf32, #tpu.memory_space<vmem>>, vector<64x64xf32>
    %cst_8 = arith.constant dense<0.000000e+00> : vector<2x64xf32>
    %9 = tpu.matmul %7, %8, %cst_8 {dimension_numbers = #tpu.dot_dimension_numbers<[1], [0], [0], [1], [0, 0, 1, 1], [], []>} : vector<2x64xf32>, vector<64x64xf32>, vector<2x64xf32> -> vector<2x64xf32>
    %c0_9 = arith.constant 0 : index
    %c0_10 = arith.constant 0 : index
    %10 = vector.load %arg5[%c0_9, %c0_10] : memref<1x64xf32, #tpu.memory_space<vmem>>, vector<1x64xf32>
    %11 = vector.broadcast %10 : vector<1x64xf32> to vector<2x64xf32>
    %12 = arith.addf %9, %11 : vector<2x64xf32>
    %cst_11 = arith.constant 0.000000e+00 : f32
    %13 = vector.broadcast %cst_11 : f32 to vector<2x64xf32>
    %14 = arith.maximumf %12, %13 : vector<2x64xf32>
    %c0_12 = arith.constant 0 : index
    %c0_13 = arith.constant 0 : index
    %15 = vector.load %arg6[%c0_12, %c0_13] : memref<64x4xf32, #tpu.memory_space<vmem>>, vector<64x4xf32>
    %cst_14 = arith.constant dense<0.000000e+00> : vector<2x4xf32>
    %16 = tpu.matmul %14, %15, %cst_14 {dimension_numbers = #tpu.dot_dimension_numbers<[1], [0], [0], [1], [0, 0, 1, 1], [], []>} : vector<2x64xf32>, vector<64x4xf32>, vector<2x4xf32> -> vector<2x4xf32>
    %c0_15 = arith.constant 0 : index
    %c0_16 = arith.constant 0 : index
    %17 = vector.load %arg7[%c0_15, %c0_16] : memref<1x4xf32, #tpu.memory_space<vmem>>, vector<1x4xf32>
    %18 = vector.broadcast %17 : vector<1x4xf32> to vector<2x4xf32>
    %19 = arith.addf %16, %18 : vector<2x4xf32>
    %c0_17 = arith.constant 0 : index
    %c0_18 = arith.constant 0 : index
    %20 = vector.load %arg8[%c0_17, %c0_18] : memref<2x4xf32, #tpu.memory_space<vmem>>, vector<2x4xf32>
    tpu.vector_store %arg8[%c0_17, %c0_18], %19 {strides = array<i32>} : memref<2x4xf32, #tpu.memory_space<vmem>>, vector<2x4xf32>,
    return
  }
  func.func @transform_0(%arg0: i32) -> (i32, i32) {
    %c0_i32 = arith.constant 0 : i32
    %c0_i32_0 = arith.constant 0 : i32
    return %arg0, %c0_i32 : i32, i32
  }
  func.func @transform_1(%arg0: i32) -> (i32, i32) {
    %c0_i32 = arith.constant 0 : i32
    %c0_i32_0 = arith.constant 0 : i32
    %c0_i32_1 = arith.constant 0 : i32
    return %c0_i32, %c0_i32_0 : i32, i32
  }
  func.func @transform_2(%arg0: i32) -> (i32, i32) {
    %c0_i32 = arith.constant 0 : i32
    %c0_i32_0 = arith.constant 0 : i32
    %c0_i32_1 = arith.constant 0 : i32
    return %c0_i32, %c0_i32_0 : i32, i32
  }
  func.func @transform_3(%arg0: i32) -> (i32, i32) {
    %c0_i32 = arith.constant 0 : i32
    %c0_i32_0 = arith.constant 0 : i32
    %c0_i32_1 = arith.constant 0 : i32
    return %c0_i32, %c0_i32_0 : i32, i32
  }
  func.func @transform_4(%arg0: i32) -> (i32, i32) {
    %c0_i32 = arith.constant 0 : i32
    %c0_i32_0 = arith.constant 0 : i32
    %c0_i32_1 = arith.constant 0 : i32
    return %c0_i32, %c0_i32_0 : i32, i32
  }
  func.func @transform_5(%arg0: i32) -> (i32, i32) {
    %c0_i32 = arith.constant 0 : i32
    %c0_i32_0 = arith.constant 0 : i32
    %c0_i32_1 = arith.constant 0 : i32
    return %c0_i32, %c0_i32_0 : i32, i32
  }
  func.func @transform_6(%arg0: i32) -> (i32, i32) {
    %c0_i32 = arith.constant 0 : i32
    %c0_i32_0 = arith.constant 0 : i32
    %c0_i32_1 = arith.constant 0 : i32
    return %c0_i32, %c0_i32_0 : i32, i32
  }
  func.func @transform_7(%arg0: i32) -> (i32, i32) {
    %c0_i32 = arith.constant 0 : i32
    %c0_i32_0 = arith.constant 0 : i32
    return %arg0, %c0_i32 : i32, i32
  }
}

</mosaic_0001>

<bundles_post_ra>
// kernel: tpu_custom_call.1
= control target key start
LH: loop header
LB: loop body
LE: loop exit
PB: predicated region body
PF: predicated region fallthrough
CT: control target
= control target key end

     0   :  { %12 = vsyncpa [#allocation3], 0  ;;  %s609_s0 = inlined_call_operand.vmem [shape: f32[2,16], index: 0, kind: input, shape index: {}]   ;;  %s610_s1 = inlined_call_operand.hbm [shape: f32[16,64], index: 1, kind: input, shape index: {}]   ;;  %s611_s2 = inlined_call_operand.vmem [shape: f32[1,64], index: 2, kind: input, shape index: {}]   ;;  %s612_s3 = inlined_call_operand.vmem [shape: f32[64,64], index: 3, kind: input, shape index: {}]   ;;  %s613_s4 = inlined_call_operand.vmem [shape: f32[1,64], index: 4, kind: input, shape index: {}]   ;;  %s614_s5 = inlined_call_operand.vmem [shape: f32[64,4], index: 5, kind: input, shape index: {}]   ;;  %s615_s6 = inlined_call_operand.vmem [shape: f32[1,4], index: 6, kind: input, shape index: {}]   ;;  %s616_s7 = inlined_call_operand.hbm [shape: f32[2,4], index: 7, kind: output, shape index: {}]  }
   0x1   :  { %13 = vsyncpa [#allocation4], 0  ;;  %s475_s24 = smov [#allocation2]   ;;  %s427_s28 = scalar_lea.hbm %s610_s1, 256 }
   0x2   :  { %s21_s25 = sshll.u32 %s475_s24, 4  ;;  %p428_p0 = scmp.ne.s32.totalorder %s610_s1, %s427_s28  ;;  %s22_s25 = int_to_ptr.vmem [resolvable:$true] %s21_s25 }
   0x3   :  { %p431_p1 = scmp.lt.u32.totalorder %s427_s28, %s610_s1 }
   0x5   :  { %p433_p2 = pnand %p431_p1, %p428_p0 }
   0x7   :  { %436 = shalt.err (!%p433_p2)
}
   0x8   :  { %s437_s10 = scalar_lea.vmem %s22_s25, 256  ;;  %p442_p4 = scmp.lt.s32.totalorder %s22_s25, %s22_s25 }
   0x9   :  { %p438_p3 = scmp.ne.s32.totalorder %s22_s25, %s437_s10  ;;  %p443_p5 = scmp.lt.s32.totalorder %s437_s10, %s437_s10 }
   0xb   :  { %p444_p6 = por %p443_p5, %p442_p4 }
   0xd   :  { %p445_p7 = pnand %p444_p6, %p438_p3 }
   0xf   :  { %448 = shalt.err (!%p445_p7)
}
  0x10   :  { %s476_s11 = smov 128   ;;  %s477_s12 = smov 8  }
  0x11   :  { %27 = dma.hbm_to_vmem [thread:$0]  %s610_s1, 256, %s22_s25, [#allocation3], %s476_s11, %s476_s11, %s477_s12  }
  0x12   :  { %471 = dma.done.wait [#allocation3], 256  }
  0x13   :  { %472 = vsyncadd [#allocation3], 4294967040  ;;  %v478_v0 = vmov 0.0|0.0   ;;  %vm479_vm0 = vmmov 0   ;;  %v480_v1 = vmov 0.0   ;;  %v42_v2 = vld [vmem:[#allocation2] sm:$0xff] }
  0x14   :  { %393 = vmatprep.subr.bf16.mxu0 %v478_v0  ;;  %352 = vmatprep.mubr.msk.f32.mxu0 %vm479_vm0, %v480_v1  ;;  %v43_v3 = vld [vmem:[#allocation2 + $0x8] sm:$0xff]  ;;  %v126_v5 = vld [vmem:[%s612_s3] sm:$0xff]  ;;  %v128_v7 = vld [vmem:[%s612_s3 + $0x10] sm:$0xff]  ;;  %vm51_vm1 = vcmask 130048   ;;  %vm141_vm2 = vcmask 523264   ;;  %s481_s27 = smov [#allocation5]  }
  0x15   :  { %396 = vmatprep.subr.bf16.mxu1 %v478_v0  ;;  %371 = vmatprep.mubr.msk.f32.mxu1 %vm479_vm0, %v480_v1  ;;  %v394_v4 = vpack.c.bf16 %v43_v3, %v42_v2  ;;  %v127_v6 = vld [vmem:[%s612_s3 + $0x8] sm:$0xff]  ;;  %v129_v9 = vld [vmem:[%s612_s3 + $0x18] sm:$0xff]  ;;  %v41_v10 = vld [vmem:[%s609_s0] sm:$0x3]  ;;  %s312_s0 = sshll.u32 %s481_s27, 4  ;;  %vm304_vm3 = vcmask 25600   ;;  %s313_s0 = int_to_ptr.vmem [resolvable:$true] %s312_s0 }
  0x16   :  { %v397_v8 = vpack.c.bf16 %v127_v6, %v126_v5  ;;  %v400_v11 = vpack.c.bf16 %v129_v9, %v128_v7  ;;  %v130_v12 = vld [vmem:[%s612_s3 + $0x20] sm:$0xff]  ;;  %v131_v13 = vld [vmem:[%s612_s3 + $0x28] sm:$0xff]  ;;  %v132_v15 = vld [vmem:[%s612_s3 + $0x30] sm:$0xff]  ;;  %p454_p9 = scmp.lt.s32.totalorder %s313_s0, %s313_s0 }
  0x17   :  { %395 = vmatpush3.bf16.msra.mxu0 %v394_v4  ;;  %v403_v14 = vpack.c.bf16 %v131_v13, %v130_v12  ;;  %v133_v16 = vld [vmem:[%s612_s3 + $0x38] sm:$0xff]  ;;  %v216_v18 = vld [vmem:[%s614_s5] sm:$0xff]  ;;  %v217_v19 = vld [vmem:[%s614_s5 + $0x8] sm:$0xff] }
  0x18   :  { %398 = vmatpush3.bf16.msra.mxu1 %v397_v8  ;;  %408 = vmatprep.subr.bf16.mxu0 %v478_v0  ;;  %v406_v17 = vpack.c.bf16 %v133_v16, %v132_v15  ;;  %v218_v20 = vld [vmem:[%s614_s5 + $0x10] sm:$0xff]  ;;  %v409_v21 = vpack.c.bf16 %v217_v19, %v216_v18  ;;  %v219_v22 = vld [vmem:[%s614_s5 + $0x18] sm:$0xff]  ;;  %v220_v24 = vld [vmem:[%s614_s5 + $0x20] sm:$0xff] }
  0x19   :  { %399 = vmatprep.subr.bf16.mxu1 %v478_v0  ;;  %v412_v23 = vpack.c.bf16 %v219_v22, %v218_v20  ;;  %v221_v25 = vld [vmem:[%s614_s5 + $0x28] sm:$0xff]  ;;  %v321_v27 = vld [vmem:[%s611_s2] ss:$0 sm:$0xff]  ;;  %v222_v32 = vld [vmem:[%s614_s5 + $0x30] sm:$0xff] }
  0x1a   :  { %353 = vmatmul.mubr.msk.f32.vlgmr.msra.gmra.mrb[0].mxu0 %vm51_vm1, %v41_v10  ;;  %v415_v26 = vpack.c.bf16 %v221_v25, %v220_v24  ;;  %v223_v33 = vld [vmem:[%s614_s5 + $0x38] sm:$0xff]  ;;  %v323_v35 = vld [vmem:[%s613_s4] ss:$0 sm:$0xff]  ;;  %s449_s5 = scalar_lea.vmem %s313_s0, 32 }
  0x1b   :  { %390 = vmatprep.mubr.msk.f32.mxu0 %vm479_vm0, %v480_v1  ;;  %410 = vmatpush3.bf16.msra.mxu0 %v409_v21  ;;  %v418_v34 = vpack.c.bf16 %v223_v33, %v222_v32  ;;  %v325_v40 = vld [vmem:[%s615_s6] ss:$0 sm:$0xff]  ;;  %p450_p8 = scmp.ne.s32.totalorder %s313_s0, %s449_s5  ;;  %p455_p10 = scmp.lt.s32.totalorder %s449_s5, %s449_s5 }
  0x1c   :  { %401 = vmatpush3.bf16.msra.mxu1 %v400_v11  ;;  %411 = vmatprep.subr.bf16.mxu0 %v478_v0 }
  0x1d   :  { %402 = vmatprep.subr.bf16.mxu1 %v478_v0  ;;  %p456_p11 = por %p455_p10, %p454_p9 }
  0x1f   :  { %413 = vmatpush3.bf16.msra.mxu0 %v412_v23  ;;  %p457_p12 = pnand %p456_p11, %p450_p8 }
  0x20   :  { %404 = vmatpush3.bf16.msra.mxu1 %v403_v14  ;;  %414 = vmatprep.subr.bf16.mxu0 %v478_v0 }
  0x21   :  { %405 = vmatprep.subr.bf16.mxu1 %v478_v0 }
  0x23   :  { %416 = vmatpush3.bf16.msra.mxu0 %v415_v26 }
  0x24   :  { %407 = vmatpush3.bf16.msra.mxu1 %v406_v17  ;;  %417 = vmatprep.subr.bf16.mxu0 %v478_v0 }
  0x27   :  { %419 = vmatpush3.bf16.msra.mxu0 %v418_v34 }
  0xed   :  { %v121_v28 = vpop.f32.mrb[0].mxu0 }
  0xee   :  { %v122_v29 = vadd.f32 %v321_v27, %v121_v28  ;;  %v354_v30 = vpop.f32.mrb[1].mxu0 }
  0xf0   :  { %v125_v31 = vmax.f32 %v122_v29, 0.0 }
  0xf2   :  { %372 = vmatmul.mubr.msk.f32.vlgmr.msra.gmra.mrb[0].mxu1 %vm141_vm2, %v125_v31 }
 0x1c5   :  { %v211_v36 = vpop.f32.mrb[0].mxu1 }
 0x1c6   :  { %v212_v37 = vadd.f32 %v323_v35, %v211_v36  ;;  %v373_v38 = vpop.f32.mrb[1].mxu1 }
 0x1c8   :  { %v215_v39 = vmax.f32 %v212_v37, 0.0 }
 0x1ca   :  { %391 = vmatmul.mubr.msk.f32.vlgmr.msra.gmra.mrb[2].mxu0 %vm141_vm2, %v215_v39 }
 0x29d   :  { %v300_v41 = vpop.f32.mrb[2].mxu0 }
 0x29e   :  { %v301_v42 = vadd.f32 %v325_v40, %v300_v41  ;;  %v392_v43 = vpop.f32.mrb[3].mxu0 }
 0x2a0   :  { %305 = vst.msk [vmem:[#allocation5] sm:$0x3] %vm304_vm3, %v301_v42 }
 0x2a1   :  { %460 = shalt.err (!%p457_p12)
}
 0x2a2   :  { %s461_s29 = scalar_lea.hbm %s616_s7, 32 }
 0x2a3   :  { %p462_p13 = scmp.ne.s32.totalorder %s616_s7, %s461_s29  ;;  %p465_p0 = scmp.lt.u32.totalorder %s461_s29, %s616_s7 }
 0x2a5   :  { %p467_p1 = pnand %p465_p0, %p462_p13 }
 0x2a7   :  { %470 = shalt.err (!%p467_p1)
}
 0x2a8   :  { %315 = dma.vmem_to_hbm [thread:$0]  %s313_s0, 32, %s616_s7, [#allocation4]  }
 0x2a9   :  { %473 = dma.done.wait [#allocation4], 32  }
 0x2aa   :  { %474 = vsyncadd [#allocation4], 4294967264 }
 0x2ab   :  { %319 = vsyncpa [#allocation3], 1 }
 0x2ac   :  { %320 = vsyncpa [#allocation4], 1 }

</bundles_post_ra>
